<compile_context>
chip_gen: v6e
topology: v6e:2x2x1
jax: 0.10.0
libtpu: 0.0.40
codegen_flags: <defaults>
</compile_context>

<pallas_src>
import functools

import jax
import jax.numpy as jnp
from jax.experimental import pallas as pl
from jax.experimental.pallas import tpu as pltpu


C_PAD = 128  # lane-dense class dimension (output last dim = one full vreg lane width)


def _round_up(x, m):
    return ((x + m - 1) // m) * m


def _pick_tiles(n, tm_req=512, tk_req=1024):
    """Pick (tm, tk, n_pad).  tm | tk and tk | n_pad so one padded size serves both layers.

    Defaults follow the review (tm=512, tk=1024 for v5e/v6e).  On v7x (64 MiB VMEM /
    TensorCore) halve the budget, e.g. tm_req=256, tk_req=1024 or (512, 512)."""
    assert tk_req % tm_req == 0
    n128 = _round_up(max(n, 1), 128)
    if n128 >= tk_req:
        tm, tk = tm_req, tk_req
    else:
        tm = tk = n128          # small graph: one block spans the whole (padded) node dim
    n_pad = _round_up(n, tk)
    return tm, tk, n_pad


# ------------------------------ Pallas kernels ------------------------------ #
def _gcn_layer1_kernel(a_ref, x_ref, w1_ref, b1_ref, w2_ref, p_ref, acc_ref):
    """Accumulate (A @ X) over k; at k==last: P = relu(AX @ W1 + b1) @ W2 (W2 padded to C_PAD)."""
    k = pl.program_id(1)

    @pl.when(k == 0)
    def _():
        acc_ref[...] = jnp.zeros_like(acc_ref)

    # Big streaming dot: bf16 inputs, f32 accumulation.
    acc_ref[...] += jnp.dot(a_ref[...], x_ref[...], preferred_element_type=jnp.float32)

    @pl.when(k == pl.num_programs(1) - 1)
    def _():
        # Small dots stay in f32 (off the critical path; no bf16 round-trip on partials).
        h = jnp.dot(acc_ref[...], w1_ref[...], preferred_element_type=jnp.float32) + b1_ref[...]
        h = jnp.maximum(h, 0.0)
        # TODO(synk): F.dropout(training=self.training) is identity in eval mode; not applied.
        p_ref[...] = jnp.dot(h, w2_ref[...],
                             preferred_element_type=jnp.float32).astype(p_ref.dtype)


def _gcn_layer2_kernel(a_ref, p_ref, b2_ref, o_ref, acc_ref, *, num_classes):
    """Accumulate (A @ P) over k; at k==last: relu(+b2) then masked softmax over valid classes."""
    k = pl.program_id(1)

    @pl.when(k == 0)
    def _():
        acc_ref[...] = jnp.zeros_like(acc_ref)

    acc_ref[...] += jnp.dot(a_ref[...], p_ref[...], preferred_element_type=jnp.float32)

    @pl.when(k == pl.num_programs(1) - 1)
    def _():
        z = jnp.maximum(acc_ref[...] + b2_ref[...], 0.0)
        # TODO(synk): second F.dropout(training=self.training) is identity in eval mode; not applied.
        # Mask lane-padding columns so they contribute 0 to the softmax normalization.
        col = jax.lax.broadcasted_iota(jnp.int32, z.shape, 1)
        z = jnp.where(col < num_classes, z, -1e30)
        z = z - jnp.max(z, axis=-1, keepdims=True)
        e = jnp.exp(z)
        inv = pl.reciprocal(jnp.sum(e, axis=-1, keepdims=True), approx=True)
        o_ref[...] = e * inv


# --------------------------------- wrapper ---------------------------------- #
def gcn_forward(edge_index, x, w1, b1, w2, b2, *, tm=512, tk=1024):
    n, f = x.shape
    hidden = w1.shape[1]
    num_classes = w2.shape[1]

    tm, tk, n_pad = _pick_tiles(n, tm, tk)
    grid = (n_pad // tm, n_pad // tk)  # (row tiles [parallel], node-contraction tiles [arbitrary])
    # NOTE(v7x): with 2 TensorCores, prefer grids where n_pad // tm >= 2 so the
    # "parallel" axis actually spans both cores; trivially 1 here at this toy size.

    # a_hat emitted directly padded + bf16 (single fused pass; no wrapper re-cast/pad).
    a_p = build_gcn_norm_adj(edge_index, n, n_pad=n_pad, dtype=jnp.bfloat16)
    x_p = jnp.zeros((n_pad, f), jnp.bfloat16).at[:n, :].set(x.astype(jnp.bfloat16))

    # Small params stay f32 (small dots run in f32 inside the epilogue).
    w1_f = w1.astype(jnp.float32)
    b1_f = b1.astype(jnp.float32).reshape(1, hidden)
    w2_p = jnp.zeros((hidden, C_PAD), jnp.float32).at[:, :num_classes].set(w2.astype(jnp.float32))
    b2_p = jnp.zeros((1, C_PAD), jnp.float32).at[:, :num_classes].set(
        b2.astype(jnp.float32).reshape(1, num_classes))

    cparams = pltpu.CompilerParams(
        dimension_semantics=("parallel", "arbitrary"),
        # Defaults are 16 MiB (v5e) / 32 MiB (v6e/v7x) scoped; raise explicitly.
        # 48 MiB fits v7x's 64 MiB physical with headroom and is plenty for these tiles.
        vmem_limit_bytes=48 * 1024 * 1024,
    )

    cost1 = pl.CostEstimate(
        flops=2 * n_pad * n_pad * f + 2 * n_pad * f * hidden + 2 * n_pad * hidden * C_PAD,
        transcendentals=0,
        bytes_accessed=n_pad * n_pad * 2 + n_pad * f * 2 + n_pad * C_PAD * 2
        + f * hidden * 4 + hidden * 4 + hidden * C_PAD * 4,
    )
    cost2 = pl.CostEstimate(
        flops=2 * n_pad * n_pad * C_PAD + 6 * n_pad * C_PAD,
        transcendentals=n_pad * C_PAD,
        bytes_accessed=n_pad * n_pad * 2 + n_pad * C_PAD * 2 + n_pad * C_PAD * 4 + C_PAD * 4,
    )

    # ---- layer 1 (+ W2 projection), (row, k)-tiled over nodes ----
    p = pl.pallas_call(
        _gcn_layer1_kernel,
        out_shape=jax.ShapeDtypeStruct((n_pad, C_PAD), jnp.bfloat16),
        grid=grid,
        in_specs=[
            pl.BlockSpec((tm, tk), lambda i, k: (i, k)),        # a_hat block
            pl.BlockSpec((tk, f), lambda i, k: (k, 0)),         # X block (contraction)
            pl.BlockSpec((f, hidden), lambda i, k: (0, 0)),     # W1 (resident)
            pl.BlockSpec((1, hidden), lambda i, k: (0, 0)),     # b1
            pl.BlockSpec((hidden, C_PAD), lambda i, k: (0, 0)),  # W2 (padded)
        ],
        out_specs=pl.BlockSpec((tm, C_PAD), lambda i, k: (i, 0)),
        scratch_shapes=[pltpu.VMEM((tm, f), jnp.float32)],       # A@X accumulator
        compiler_params=cparams,
        cost_estimate=cost1,
    )(a_p, x_p, w1_f, b1_f, w2_p)

    # ---- layer 2 + softmax, (row, k)-tiled over nodes ----
    out = pl.pallas_call(
        functools.partial(_gcn_layer2_kernel, num_classes=num_classes),
        out_shape=jax.ShapeDtypeStruct((n_pad, C_PAD), jnp.float32),
        grid=grid,
        in_specs=[
            pl.BlockSpec((tm, tk), lambda i, k: (i, k)),        # a_hat block
            pl.BlockSpec((tk, C_PAD), lambda i, k: (k, 0)),     # P block (contraction)
            pl.BlockSpec((1, C_PAD), lambda i, k: (0, 0)),      # b2 (padded)
        ],
        out_specs=pl.BlockSpec((tm, C_PAD), lambda i, k: (i, 0)),
        scratch_shapes=[pltpu.VMEM((tm, C_PAD), jnp.float32)],   # A@P accumulator
        compiler_params=cparams,
        cost_estimate=cost2,
    )(a_p, p, b2_p)

    return out[:n, :num_classes]


# ------------------------- plain-JAX glue (graph) --------------------------- #
def build_gcn_norm_adj(edge_index, num_nodes, *, n_pad=None, dtype=jnp.float32):
    """Dense D^{-1/2}(A+I)D^{-1/2}; optionally emitted pre-padded/cast in a single fused pass."""
    src, dst = edge_index[0], edge_index[1]
    adj = jnp.zeros((num_nodes, num_nodes), jnp.float32).at[dst, src].set(1.0)
    adj = jnp.maximum(adj, jnp.eye(num_nodes, dtype=jnp.float32))  # exactly one self loop / node
    deg = jnp.sum(adj, axis=1)
    d_inv_sqrt = jnp.where(deg > 0, jax.lax.rsqrt(deg), 0.0)
    a_hat = (d_inv_sqrt[:, None] * adj * d_inv_sqrt[None, :]).astype(dtype)
    if n_pad is None or n_pad == num_nodes:
        return a_hat
    return jnp.zeros((n_pad, n_pad), dtype).at[:num_nodes, :num_nodes].set(a_hat)


def gcn_reference(a_hat, x, w1, b1, w2, b2):
    h = jnp.maximum(a_hat @ (x @ w1) + b1, 0.0)
    z = jnp.maximum(a_hat @ (h @ w2) + b2, 0.0)
    return jax.nn.softmax(z, axis=1)


def glorot(key, shape):
    fan_in, fan_out = shape
    limit = jnp.sqrt(6.0 / (fan_in + fan_out))
    return jax.random.uniform(key, shape, jnp.float32, -limit, limit)


if __name__ == "__main__":
    num_nodes = 16
    num_node_features = 8
    hidden = 32
    num_classes = 4
    num_edges = 40

    key = jax.random.PRNGKey(0)
    k_x, k_src, k_dst, k_w1, k_w2 = jax.random.split(key, 5)

    # deterministic synthetic graph + features
    x = jax.random.normal(k_x, (num_nodes, num_node_features), jnp.float32)
    src = jax.random.randint(k_src, (num_edges,), 0, num_nodes, jnp.int32)
    dst = jax.random.randint(k_dst, (num_edges,), 0, num_nodes, jnp.int32)
    edge_index = jnp.stack([src, dst], axis=0)  # [2, E]

    # deterministic parameters (GCNConv: weight [in, out], bias [out])
    w1 = glorot(k_w1, (num_node_features, hidden))
    b1 = jnp.zeros((1, hidden), jnp.float32)
    w2 = glorot(k_w2, (hidden, num_classes))
    b2 = jnp.zeros((1, num_classes), jnp.float32)

    out = jax.block_until_ready(gcn_forward(edge_index, x, w1, b1, w2, b2))

    a_hat_f32 = build_gcn_norm_adj(edge_index, num_nodes)  # f32, unpadded, for the reference
    ref = gcn_reference(a_hat_f32, x, w1, b1, w2, b2)

    assert out.shape == (num_nodes, num_classes)
    assert jnp.allclose(jnp.sum(out, axis=1), 1.0, atol=1e-2)      # valid softmax rows
    assert jnp.allclose(out, ref, atol=5e-2)                       # matches f32 reference (bf16 tol)
    print("KERNEL_OK")
</pallas_src>

<mosaic_0001>
module attributes {stable_mosaic.version = 11 : i64} {
  func.func @_gcn_layer1_kernel(%arg0: i32, %arg1: i32, %arg2: memref<128x128xbf16, #tpu.memory_space<vmem>>, %arg3: memref<128x8xbf16, #tpu.memory_space<vmem>>, %arg4: memref<8x32xf32, #tpu.memory_space<vmem>>, %arg5: memref<1x32xf32, #tpu.memory_space<vmem>>, %arg6: memref<32x128xf32, #tpu.memory_space<vmem>>, %arg7: memref<128x128xbf16, #tpu.memory_space<vmem>>, %arg8: memref<128x8xf32, #tpu.memory_space<vmem>>) attributes {dimension_semantics = [#tpu.dimension_semantics<parallel>, #tpu.dimension_semantics<arbitrary>], iteration_bounds = array<i64: 1, 1>, scalar_prefetch = 0 : i64, scratch_operands = 1 : i64, tpu.core_type = #tpu.core_type<tc>, window_params = [{transform_indices = @transform_0, window_bounds = array<i64: 128, 128>}, {transform_indices = @transform_1, window_bounds = array<i64: 128, 8>}, {pipeline_mode = #tpu.pipeline_mode<synchronous>, transform_indices = @transform_2, window_bounds = array<i64: 8, 32>}, {pipeline_mode = #tpu.pipeline_mode<synchronous>, transform_indices = @transform_3, window_bounds = array<i64: 1, 32>}, {pipeline_mode = #tpu.pipeline_mode<synchronous>, transform_indices = @transform_4, window_bounds = array<i64: 32, 128>}, {transform_indices = @transform_5, window_bounds = array<i64: 128, 128>}]} {
    %c0_i32 = arith.constant 0 : i32
    %0 = arith.cmpi eq, %arg1, %c0_i32 : i32
    %1 = arith.extui %0 : i1 to i32
    %c0_i32_0 = arith.constant 0 : i32
    %2 = arith.cmpi ne, %1, %c0_i32_0 : i32
    scf.if %2 {
      %cst_10 = arith.constant 0.000000e+00 : f32
      %12 = vector.broadcast %cst_10 : f32 to vector<128x8xf32>
      %c0_11 = arith.constant 0 : index
      %c0_12 = arith.constant 0 : index
      %13 = vector.load %arg8[%c0_11, %c0_12] : memref<128x8xf32, #tpu.memory_space<vmem>>, vector<128x8xf32>
      tpu.vector_store %arg8[%c0_11, %c0_12], %12 {strides = array<i32>} : memref<128x8xf32, #tpu.memory_space<vmem>>, vector<128x8xf32>,
    } else {
    }
    %c0 = arith.constant 0 : index
    %c0_1 = arith.constant 0 : index
    %3 = vector.load %arg8[%c0, %c0_1] : memref<128x8xf32, #tpu.memory_space<vmem>>, vector<128x8xf32>
    %c0_2 = arith.constant 0 : index
    %c0_3 = arith.constant 0 : index
    %4 = vector.load %arg2[%c0_2, %c0_3] : memref<128x128xbf16, #tpu.memory_space<vmem>>, vector<128x128xbf16>
    %c0_4 = arith.constant 0 : index
    %c0_5 = arith.constant 0 : index
    %5 = vector.load %arg3[%c0_4, %c0_5] : memref<128x8xbf16, #tpu.memory_space<vmem>>, vector<128x8xbf16>
    %cst = arith.constant dense<0.000000e+00> : vector<128x8xf32>
    %6 = tpu.matmul %4, %5, %cst {dimension_numbers = #tpu.dot_dimension_numbers<[1], [0], [0], [1], [0, 0, 1, 1], [], []>} : vector<128x128xbf16>, vector<128x8xbf16>, vector<128x8xf32> -> vector<128x8xf32>
    %7 = arith.addf %3, %6 : vector<128x8xf32>
    %c0_6 = arith.constant 0 : index
    %c0_7 = arith.constant 0 : index
    %8 = vector.load %arg8[%c0_6, %c0_7] : memref<128x8xf32, #tpu.memory_space<vmem>>, vector<128x8xf32>
    tpu.vector_store %arg8[%c0_6, %c0_7], %7 {strides = array<i32>} : memref<128x8xf32, #tpu.memory_space<vmem>>, vector<128x8xf32>,
    %c0_i32_8 = arith.constant 0 : i32
    %9 = arith.cmpi eq, %arg1, %c0_i32_8 : i32
    %10 = arith.extui %9 : i1 to i32
    %c0_i32_9 = arith.constant 0 : i32
    %11 = arith.cmpi ne, %10, %c0_i32_9 : i32
    scf.if %11 {
      %c0_10 = arith.constant 0 : index
      %c0_11 = arith.constant 0 : index
      %12 = vector.load %arg8[%c0_10, %c0_11] : memref<128x8xf32, #tpu.memory_space<vmem>>, vector<128x8xf32>
      %c0_12 = arith.constant 0 : index
      %c0_13 = arith.constant 0 : index
      %13 = vector.load %arg4[%c0_12, %c0_13] : memref<8x32xf32, #tpu.memory_space<vmem>>, vector<8x32xf32>
      %cst_14 = arith.constant dense<0.000000e+00> : vector<128x32xf32>
      %14 = tpu.matmul %12, %13, %cst_14 {dimension_numbers = #tpu.dot_dimension_numbers<[1], [0], [0], [1], [0, 0, 1, 1], [], []>} : vector<128x8xf32>, vector<8x32xf32>, vector<128x32xf32> -> vector<128x32xf32>
      %c0_15 = arith.constant 0 : index
      %c0_16 = arith.constant 0 : index
      %15 = vector.load %arg5[%c0_15, %c0_16] : memref<1x32xf32, #tpu.memory_space<vmem>>, vector<1x32xf32>
      %16 = vector.broadcast %15 : vector<1x32xf32> to vector<128x32xf32>
      %17 = arith.addf %14, %16 : vector<128x32xf32>
      %cst_17 = arith.constant 0.000000e+00 : f32
      %18 = vector.broadcast %cst_17 : f32 to vector<128x32xf32>
      %19 = arith.maximumf %17, %18 : vector<128x32xf32>
      %c0_18 = arith.constant 0 : index
      %c0_19 = arith.constant 0 : index
      %20 = vector.load %arg6[%c0_18, %c0_19] : memref<32x128xf32, #tpu.memory_space<vmem>>, vector<32x128xf32>
      %cst_20 = arith.constant dense<0.000000e+00> : vector<128x128xf32>
      %21 = tpu.matmul %19, %20, %cst_20 {dimension_numbers = #tpu.dot_dimension_numbers<[1], [0], [0], [1], [0, 0, 1, 1], [], []>} : vector<128x32xf32>, vector<32x128xf32>, vector<128x128xf32> -> vector<128x128xf32>
      %22 = arith.truncf %21 : vector<128x128xf32> to vector<128x128xbf16>
      %c0_21 = arith.constant 0 : index
      %c0_22 = arith.constant 0 : index
      %23 = vector.load %arg7[%c0_21, %c0_22] : memref<128x128xbf16, #tpu.memory_space<vmem>>, vector<128x128xbf16>
      tpu.vector_store %arg7[%c0_21, %c0_22], %22 {strides = array<i32>} : memref<128x128xbf16, #tpu.memory_space<vmem>>, vector<128x128xbf16>,
    } else {
    }
    return
  }
  func.func @transform_0(%arg0: i32, %arg1: i32) -> (i32, i32) {
    %c0_i32 = arith.constant 0 : i32
    return %arg0, %arg1 : i32, i32
  }
  func.func @transform_1(%arg0: i32, %arg1: i32) -> (i32, i32) {
    %c0_i32 = arith.constant 0 : i32
    %c0_i32_0 = arith.constant 0 : i32
    return %arg1, %c0_i32 : i32, i32
  }
  func.func @transform_2(%arg0: i32, %arg1: i32) -> (i32, i32) {
    %c0_i32 = arith.constant 0 : i32
    %c0_i32_0 = arith.constant 0 : i32
    %c0_i32_1 = arith.constant 0 : i32
    return %c0_i32, %c0_i32_0 : i32, i32
  }
  func.func @transform_3(%arg0: i32, %arg1: i32) -> (i32, i32) {
    %c0_i32 = arith.constant 0 : i32
    %c0_i32_0 = arith.constant 0 : i32
    %c0_i32_1 = arith.constant 0 : i32
    return %c0_i32, %c0_i32_0 : i32, i32
  }
  func.func @transform_4(%arg0: i32, %arg1: i32) -> (i32, i32) {
    %c0_i32 = arith.constant 0 : i32
    %c0_i32_0 = arith.constant 0 : i32
    %c0_i32_1 = arith.constant 0 : i32
    return %c0_i32, %c0_i32_0 : i32, i32
  }
  func.func @transform_5(%arg0: i32, %arg1: i32) -> (i32, i32) {
    %c0_i32 = arith.constant 0 : i32
    %c0_i32_0 = arith.constant 0 : i32
    return %arg0, %c0_i32 : i32, i32
  }
}

</mosaic_0001>

<bundles_post_ra>
// kernel: tpu_custom_call.1
= control target key start
LH: loop header
LB: loop body
LE: loop exit
PB: predicated region body
PF: predicated region fallthrough
CT: control target
= control target key end

     0   :  { %10 = vsyncpa [#allocation4], 0  ;;  %s1398_s0 = inlined_call_operand.vmem [shape: bf16[128,128], index: 0, kind: input, shape index: {}]   ;;  %s1399_s1 = inlined_call_operand.vmem [shape: bf16[128,8], index: 1, kind: input, shape index: {}]   ;;  %s1400_s2 = inlined_call_operand.hbm [shape: f32[8,32], index: 2, kind: input, shape index: {}]   ;;  %s1401_s3 = inlined_call_operand.vmem [shape: f32[1,32], index: 3, kind: input, shape index: {}]   ;;  %s1402_s4 = inlined_call_operand.hbm [shape: f32[32,128], index: 4, kind: input, shape index: {}]   ;;  %s1403_s5 = inlined_call_operand.hbm [shape: bf16[128,128], index: 5, kind: output, shape index: {}]  }
   0x1   :  { %11 = vsyncpa [#allocation7], 0 }
   0x2   :  { %12 = vsyncpa [#allocation5], 0  ;;  %s1236_s18 = smov [#allocation3]   ;;  %s1237_s20 = smov [#allocation6]  }
   0x3   :  { %s23_s19 = sshll.u32 %s1236_s18, 4  ;;  %s34_s21 = sshll.u32 %s1237_s20, 4  ;;  %s24_s19 = int_to_ptr.vmem [resolvable:$true] %s23_s19  ;;  %s35_s21 = int_to_ptr.vmem [resolvable:$true] %s34_s21 }
   0x4   :  { %s1178_s22 = scalar_lea.vmem %s24_s19, 128  ;;  %p1183_p1 = scmp.lt.s32.totalorder %s24_s19, %s24_s19 }
   0x5   :  { %p1179_p0 = scmp.ne.s32.totalorder %s24_s19, %s1178_s22  ;;  %p1184_p2 = scmp.lt.s32.totalorder %s1178_s22, %s1178_s22 }
   0x7   :  { %p1185_p3 = por %p1184_p2, %p1183_p1 }
   0x9   :  { %p1186_p4 = pnand %p1185_p3, %p1179_p0 }
   0xb   :  { %1189 = shalt.err (!%p1186_p4)
}
   0xc   :  { %26 = dma.hbm_to_vmem [thread:$0]  %s1400_s2, 128, %s24_s19, [#allocation4]  }
   0xd   :  { %s1198_s25 = scalar_lea.vmem %s35_s21, 512  ;;  %p1203_p6 = scmp.lt.s32.totalorder %s35_s21, %s35_s21 }
   0xe   :  { %p1199_p5 = scmp.ne.s32.totalorder %s35_s21, %s1198_s25  ;;  %p1204_p7 = scmp.lt.s32.totalorder %s1198_s25, %s1198_s25 }
  0x10   :  { %p1205_p8 = por %p1204_p7, %p1203_p6 }
  0x12   :  { %p1206_p9 = pnand %p1205_p8, %p1199_p5 }
  0x14   :  { %1209 = shalt.err (!%p1206_p9)
}
  0x15   :  { %s1238_s26 = smov 128   ;;  %s1239_s27 = smov 8  }
  0x16   :  { %40 = dma.hbm_to_vmem [thread:$0]  %s1402_s4, 512, %s35_s21, [#allocation7], %s1238_s26, %s1238_s26, %s1239_s27  }
  0x17   :  { %1230 = dma.done.wait [#allocation4], 128  }
  0x18   :  { %1231 = vsyncadd [#allocation4], 4294967168 }
  0x19   :  { %1232 = dma.done.wait [#allocation7], 512  }
  0x1a   :  { %1233 = vsyncadd [#allocation7], 4294966784  ;;  %vm52_vm0 = vcmask 64512   ;;  %v1240_v0 = vmov 0.0   ;;  %v1154_v1 = vld [vmem:[%s1399_s1 + $0x38] sm:$0xff]   ;;  %v1155_v2 = vld [vmem:[%s1399_s1 + $0x30] sm:$0xff]  }
  0x1b   :  { %55 = vst.msk [vmem:[#allocation2 + $0x10] sm:$0xff] %vm52_vm0, %v1240_v0  ;;  %53 = vst.msk [vmem:[#allocation2] sm:$0xff] %vm52_vm0, %v1240_v0  ;;  %1056 = vmatprep.subr.bf16.mxu0 %v1154_v1  ;;  %v1156_v3 = vld [vmem:[%s1399_s1 + $0x28] sm:$0xff]   ;;  %v1157_v4 = vld [vmem:[%s1399_s1 + $0x20] sm:$0xff]   ;;  %vm583_vm1 = vcmask 261120  }
  0x1c   :  { %54 = vst.msk [vmem:[#allocation2 + $0x8] sm:$0xff] %vm52_vm0, %v1240_v0  ;;  %56 = vst.msk [vmem:[#allocation2 + $0x18] sm:$0xff] %vm52_vm0, %v1240_v0  ;;  %1057 = vmatpush3.bf16.msra.mxu0 %v1154_v1  ;;  %v1162_v5 = vld [vmem:[%s1398_s0] sm:$0xff]   ;;  %v1158_v6 = vld [vmem:[%s1399_s1 + $0x18] sm:$0xff]  }
  0x1d   :  { %57 = vst.msk [vmem:[#allocation2 + $0x20] sm:$0xff] %vm52_vm0, %v1240_v0  ;;  %58 = vst.msk [vmem:[#allocation2 + $0x28] sm:$0xff] %vm52_vm0, %v1240_v0  ;;  %1058 = vmatprep.subr.bf16.mxu0 %v1155_v2  ;;  %1072 = vmatprep.mubr.bf16.mxu0 %v1162_v5  ;;  %v1159_v7 = vld [vmem:[%s1399_s1 + $0x10] sm:$0xff]   ;;  %v1160_v8 = vld [vmem:[%s1399_s1 + $0x8] sm:$0xff]  }
  0x1e   :  { %59 = vst.msk [vmem:[#allocation2 + $0x30] sm:$0xff] %vm52_vm0, %v1240_v0  ;;  %60 = vst.msk [vmem:[#allocation2 + $0x38] sm:$0xff] %vm52_vm0, %v1240_v0  ;;  %v1161_v9 = vld [vmem:[%s1399_s1] sm:$0xff]   ;;  %v1163_v10 = vld [vmem:[%s1398_s0 + $0x8] sm:$0xff]  }
  0x1f   :  { %61 = vst.msk [vmem:[#allocation2 + $0x40] sm:$0xff] %vm52_vm0, %v1240_v0  ;;  %62 = vst.msk [vmem:[#allocation2 + $0x48] sm:$0xff] %vm52_vm0, %v1240_v0  ;;  %v1164_v11 = vld [vmem:[%s1398_s0 + $0x10] sm:$0xff]   ;;  %v1165_v12 = vld [vmem:[%s1398_s0 + $0x18] sm:$0xff]  }
  0x20   :  { %63 = vst.msk [vmem:[#allocation2 + $0x50] sm:$0xff] %vm52_vm0, %v1240_v0  ;;  %64 = vst.msk [vmem:[#allocation2 + $0x58] sm:$0xff] %vm52_vm0, %v1240_v0  ;;  %1059 = vmatpush3.bf16.msra.mxu0 %v1155_v2  ;;  %v1166_v13 = vld [vmem:[%s1398_s0 + $0x20] sm:$0xff]   ;;  %v1167_v14 = vld [vmem:[%s1398_s0 + $0x28] sm:$0xff]  }
  0x21   :  { %65 = vst.msk [vmem:[#allocation2 + $0x60] sm:$0xff] %vm52_vm0, %v1240_v0  ;;  %66 = vst.msk [vmem:[#allocation2 + $0x68] sm:$0xff] %vm52_vm0, %v1240_v0  ;;  %1060 = vmatprep.subr.bf16.mxu0 %v1156_v3  ;;  %v1168_v15 = vld [vmem:[%s1398_s0 + $0x30] sm:$0xff]   ;;  %v1169_v16 = vld [vmem:[%s1398_s0 + $0x38] sm:$0xff]  }
  0x22   :  { %67 = vst.msk [vmem:[#allocation2 + $0x70] sm:$0xff] %vm52_vm0, %v1240_v0  ;;  %68 = vst.msk [vmem:[#allocation2 + $0x78] sm:$0xff] %vm52_vm0, %v1240_v0  ;;  %v362_v17 = vld [vmem:[#allocation3] sm:$0xff]  ;;  %v71_v19 = vld [vmem:[#allocation2 + $0x10] sm:$0xff] }
  0x23   :  { %1088 = vmatprep.subr.mxu1 %v362_v17  ;;  %v582_v18 = vld [vmem:[#allocation6 + $0x18] sm:$0xff]  ;;  %v72_v24 = vld [vmem:[#allocation2 + $0x18] sm:$0xff]  ;;  %v70_v27 = vld [vmem:[#allocation2 + $0x8] sm:$0xff] }
  0x24   :  { %1061 = vmatpush3.bf16.msra.mxu0 %v1156_v3  ;;  %1089 = vmatpush3.msra.mxu1 %v362_v17  ;;  %v69_v21 = vld [vmem:[#allocation2] sm:$0xff]  ;;  %v74_v40 = vld [vmem:[#allocation2 + $0x28] sm:$0xff]  ;;  %v581_v48 = vld [vmem:[#allocation6 + $0x10] sm:$0xff] }
  0x25   :  { %1062 = vmatprep.subr.bf16.mxu0 %v1157_v4  ;;  %1114 = vmatprep.subr.mxu1 %v582_v18  ;;  %v75_v30 = vld [vmem:[#allocation2 + $0x30] sm:$0xff]  ;;  %v73_v33 = vld [vmem:[#allocation2 + $0x20] sm:$0xff]  ;;  %v76_v36 = vld [vmem:[#allocation2 + $0x38] sm:$0xff] }
  0x26   :  { %v77_v47 = vld [vmem:[#allocation2 + $0x40] sm:$0xff]  ;;  %v580_v53 = vld [vmem:[#allocation6 + $0x8] sm:$0xff]  ;;  %v78_v55 = vld [vmem:[#allocation2 + $0x48] sm:$0xff] }
  0x27   :  { %v79_v43 = vld [vmem:[#allocation2 + $0x50] sm:$0xff]  ;;  %v80_v52 = vld [vmem:[#allocation2 + $0x58] sm:$0xff]  ;;  %v579_v59 = vld [vmem:[#allocation6] sm:$0xff] }
  0x28   :  { %1063 = vmatpush3.bf16.msra.mxu0 %v1157_v4  ;;  %v81_v2 = vld [vmem:[#allocation2 + $0x60] sm:$0xff] }
  0x29   :  { %1064 = vmatprep.subr.bf16.mxu0 %v1158_v6  ;;  %v83_v62 = vld [vmem:[#allocation2 + $0x70] sm:$0xff] }
  0x2c   :  { %1065 = vmatpush3.bf16.msra.mxu0 %v1158_v6  ;;  %v84_v6 = vld [vmem:[#allocation2 + $0x78] sm:$0xff] }
  0x2d   :  { %1066 = vmatprep.subr.bf16.mxu0 %v1159_v7 }
  0x30   :  { %1067 = vmatpush3.bf16.msra.mxu0 %v1159_v7 }
  0x31   :  { %1068 = vmatprep.subr.bf16.mxu0 %v1160_v8 }
  0x34   :  { %1069 = vmatpush3.bf16.msra.mxu0 %v1160_v8 }
  0x35   :  { %1070 = vmatprep.subr.bf16.mxu0 %v1161_v9 }
  0x38   :  { %1071 = vmatpush3.bf16.msra.mxu0 %v1161_v9 }
  0x3b   :  { %1073 = vmatmul.mubr.bf16.vlgmr.msra.gmra.mxu0 %v1163_v10  ;;  %v82_v10 = vld [vmem:[#allocation2 + $0x68] sm:$0xff] }
  0x3c   :  { %1076 = vmatprep.mubr.bf16.mxu0 %v1164_v11 }
  0x43   :  { %1077 = vmatmul.mubr.bf16.gmra.mxu0 %v1165_v12 }
  0x44   :  { %1080 = vmatprep.mubr.bf16.mxu0 %v1166_v13 }
  0x4b   :  { %1081 = vmatmul.mubr.bf16.gmra.mxu0 %v1167_v14 }
  0x4c   :  { %1084 = vmatprep.mubr.bf16.mxu0 %v1168_v15 }
  0x53   :  { %1085 = vmatmul.mubr.bf16.gmra.mxu0 %v1169_v16 }
  0xfb   :  { %v1074_v20 = vpop.f32.mrf.mxu0 }
  0xfc   :  { %v312_v22 = vadd.f32 %v1074_v20, %v71_v19 }
  0xfd   :  { %v247_v23 = vpop.f32.mrf.mxu0 }
  0xfe   :  { %329 = vst.msk [vmem:[#allocation2 + $0x10] sm:$0xff] %vm52_vm0, %v312_v22  ;;  %v310_v25 = vadd.f32 %v247_v23, %v69_v21  ;;  %v891_v22 = vld [vmem:[%s1401_s3] ss:$0 sm:$0xff]  ;;  %s1241_s3 = smov [#allocation8]  }
  0xff   :  { %v1075_v26 = vpop.f32.mrf.mxu0  ;;  %s862_s8 = sshll.u32 %s1241_s3, 4  ;;  %s863_s8 = int_to_ptr.vmem [resolvable:$true] %s862_s8 }
 0x100   :  { %327 = vst.msk [vmem:[#allocation2] sm:$0xff] %vm52_vm0, %v310_v25  ;;  %v313_v28 = vadd.f32 %v1075_v26, %v72_v24  ;;  %s1210_s9 = scalar_lea.vmem %s863_s8, 1024  ;;  %p1215_p11 = scmp.lt.s32.totalorder %s863_s8, %s863_s8 }
 0x101   :  { %v250_v29 = vpop.f32.mrf.mxu0  ;;  %p1211_p10 = scmp.ne.s32.totalorder %s863_s8, %s1210_s9  ;;  %p1216_p12 = scmp.lt.s32.totalorder %s1210_s9, %s1210_s9 }
 0x102   :  { %330 = vst.msk [vmem:[#allocation2 + $0x18] sm:$0xff] %vm52_vm0, %v313_v28  ;;  %v311_v31 = vadd.f32 %v250_v29, %v70_v27 }
 0x103   :  { %v1078_v32 = vpop.f32.mrf.mxu0  ;;  %p1217_p13 = por %p1216_p12, %p1215_p11 }
 0x104   :  { %328 = vst.msk [vmem:[#allocation2 + $0x8] sm:$0xff] %vm52_vm0, %v311_v31  ;;  %v316_v34 = vadd.f32 %v1078_v32, %v75_v30 }
 0x105   :  { %v263_v35 = vpop.f32.mrf.mxu0  ;;  %v348_v50 = vld [vmem:[#allocation2 + $0x10] sm:$0xff]  ;;  %p1218_p0 = pnand %p1217_p13, %p1211_p10 }
 0x106   :  { %333 = vst.msk [vmem:[#allocation2 + $0x30] sm:$0xff] %vm52_vm0, %v316_v34  ;;  %v314_v37 = vadd.f32 %v263_v35, %v73_v33 }
 0x107   :  { %v1079_v38 = vpop.f32.mrf.mxu0  ;;  %v346_v39 = vld [vmem:[#allocation2] sm:$0xff] }
 0x108   :  { %331 = vst.msk [vmem:[#allocation2 + $0x20] sm:$0xff] %vm52_vm0, %v314_v37  ;;  %v317_v41 = vadd.f32 %v1079_v38, %v76_v36  ;;  %1090 = vmatprep.mubr.msk.f32.mxu1 %vm52_vm0, %v346_v39 }
 0x109   :  { %v266_v42 = vpop.f32.mrf.mxu0  ;;  %v349_v57 = vld [vmem:[#allocation2 + $0x18] sm:$0xff] }
 0x10a   :  { %334 = vst.msk [vmem:[#allocation2 + $0x38] sm:$0xff] %vm52_vm0, %v317_v41  ;;  %v315_v44 = vadd.f32 %v266_v42, %v74_v40 }
 0x10b   :  { %v1082_v45 = vpop.f32.mrf.mxu0  ;;  %v347_v46 = vld [vmem:[#allocation2 + $0x8] sm:$0xff] }
 0x10c   :  { %332 = vst.msk [vmem:[#allocation2 + $0x28] sm:$0xff] %vm52_vm0, %v315_v44  ;;  %v320_v49 = vadd.f32 %v1082_v45, %v79_v43  ;;  %1091 = vmatmul.mubr.msk.f32.vlgmr.msra.gmra.mxu1 %vm52_vm0, %v347_v46 }
 0x10d   :  { %v279_v51 = vpop.f32.mrf.mxu0  ;;  %1093 = vmatprep.mubr.msk.f32.mxu1 %vm52_vm0, %v348_v50  ;;  %1115 = vmatpush3.msra.mxu1 %v582_v18  ;;  %v352_v4 = vld [vmem:[#allocation2 + $0x30] sm:$0xff] }
 0x10e   :  { %337 = vst.msk [vmem:[#allocation2 + $0x50] sm:$0xff] %vm52_vm0, %v320_v49  ;;  %v318_v54 = vadd.f32 %v279_v51, %v77_v47  ;;  %1116 = vmatprep.subr.mxu1 %v581_v48 }
 0x10f   :  { %v1083_v56 = vpop.f32.mrf.mxu0  ;;  %v350_v58 = vld [vmem:[#allocation2 + $0x20] sm:$0xff]  ;;  %1117 = vmatpush3.msra.mxu1 %v581_v48 }
 0x110   :  { %335 = vst.msk [vmem:[#allocation2 + $0x40] sm:$0xff] %vm52_vm0, %v318_v54  ;;  %v321_v60 = vadd.f32 %v1083_v56, %v80_v52  ;;  %1094 = vmatmul.mubr.msk.f32.gmra.mxu1 %vm52_vm0, %v349_v57  ;;  %1118 = vmatprep.subr.mxu1 %v580_v53 }
 0x111   :  { %v282_v61 = vpop.f32.mrf.mxu0  ;;  %1096 = vmatprep.mubr.msk.f32.mxu1 %vm52_vm0, %v350_v58  ;;  %1119 = vmatpush3.msra.mxu1 %v580_v53  ;;  %v353_v9 = vld [vmem:[#allocation2 + $0x38] sm:$0xff] }
 0x112   :  { %338 = vst.msk [vmem:[#allocation2 + $0x58] sm:$0xff] %vm52_vm0, %v321_v60  ;;  %v319_v63 = vadd.f32 %v282_v61, %v78_v55  ;;  %1120 = vmatprep.subr.mxu1 %v579_v59 }
 0x113   :  { %v1086_v0 = vpop.f32.mrf.mxu0  ;;  %v351_v1 = vld [vmem:[#allocation2 + $0x28] sm:$0xff]  ;;  %1121 = vmatpush3.msra.mxu1 %v579_v59 }
 0x114   :  { %336 = vst.msk [vmem:[#allocation2 + $0x48] sm:$0xff] %vm52_vm0, %v319_v63  ;;  %v324_v3 = vadd.f32 %v1086_v0, %v83_v62  ;;  %1097 = vmatmul.mubr.msk.f32.gmra.mxu1 %vm52_vm0, %v351_v1 }
 0x115   :  { %v295_v5 = vpop.f32.mrf.mxu0  ;;  %1099 = vmatprep.mubr.msk.f32.mxu1 %vm52_vm0, %v352_v4  ;;  %v356_v16 = vld [vmem:[#allocation2 + $0x50] sm:$0xff] }
 0x116   :  { %341 = vst.msk [vmem:[#allocation2 + $0x70] sm:$0xff] %vm52_vm0, %v324_v3  ;;  %v322_v7 = vadd.f32 %v295_v5, %v81_v2 }
 0x117   :  { %v1087_v8 = vpop.f32.mrf.mxu0  ;;  %v354_v11 = vld [vmem:[#allocation2 + $0x40] sm:$0xff] }
 0x118   :  { %339 = vst.msk [vmem:[#allocation2 + $0x60] sm:$0xff] %vm52_vm0, %v322_v7  ;;  %v325_v12 = vadd.f32 %v1087_v8, %v84_v6  ;;  %1100 = vmatmul.mubr.msk.f32.gmra.mxu1 %vm52_vm0, %v353_v9 }
 0x119   :  { %v298_v13 = vpop.f32.mrf.mxu0  ;;  %1102 = vmatprep.mubr.msk.f32.mxu1 %vm52_vm0, %v354_v11  ;;  %v357_v17 = vld [vmem:[#allocation2 + $0x58] sm:$0xff] }
 0x11a   :  { %342 = vst.msk [vmem:[#allocation2 + $0x78] sm:$0xff] %vm52_vm0, %v325_v12  ;;  %v323_v14 = vadd.f32 %v298_v13, %v82_v10 }
 0x11b   :  { %v355_v15 = vld [vmem:[#allocation2 + $0x48] sm:$0xff] }
 0x11c   :  { %340 = vst.msk [vmem:[#allocation2 + $0x68] sm:$0xff] %vm52_vm0, %v323_v14  ;;  %1103 = vmatmul.mubr.msk.f32.gmra.mxu1 %vm52_vm0, %v355_v15 }
 0x11d   :  { %1105 = vmatprep.mubr.msk.f32.mxu1 %vm52_vm0, %v356_v16  ;;  %v360_v20 = vld [vmem:[#allocation2 + $0x70] sm:$0xff] }
 0x11f   :  { %v358_v18 = vld [vmem:[#allocation2 + $0x60] sm:$0xff] }
 0x120   :  { %1106 = vmatmul.mubr.msk.f32.gmra.mxu1 %vm52_vm0, %v357_v17 }
 0x121   :  { %1108 = vmatprep.mubr.msk.f32.mxu1 %vm52_vm0, %v358_v18  ;;  %v361_v21 = vld [vmem:[#allocation2 + $0x78] sm:$0xff] }
 0x123   :  { %v359_v19 = vld [vmem:[#allocation2 + $0x68] sm:$0xff] }
 0x124   :  { %1109 = vmatmul.mubr.msk.f32.gmra.mxu1 %vm52_vm0, %v359_v19 }
 0x125   :  { %1111 = vmatprep.mubr.msk.f32.mxu1 %vm52_vm0, %v360_v20 }
 0x128   :  { %1112 = vmatmul.mubr.msk.f32.gmra.mxu1 %vm52_vm0, %v361_v21 }
 0x1cc   :  { %v1092_v23 = vpop.f32.mrf.mxu1 }
 0x1cd   :  { %v490_v24 = vadd.f32 %v1092_v23, %v891_v22 }
 0x1ce   :  { %v484_v25 = vpop.f32.mrf.mxu1 }
 0x1cf   :  { %v485_v26 = vadd.f32 %v891_v22, %v484_v25  ;;  %v564_v29 = vmax.f32 %v490_v24, 0.0 }
 0x1d0   :  { %v1095_v27 = vpop.f32.mrf.mxu1 }
 0x1d1   :  { %v563_v28 = vmax.f32 %v485_v26, 0.0  ;;  %v500_v30 = vadd.f32 %v1095_v27, %v891_v22 }
 0x1d2   :  { %v494_v31 = vpop.f32.mrf.mxu1 }
 0x1d3   :  { %v495_v32 = vadd.f32 %v891_v22, %v494_v31  ;;  %1122 = vmatprep.mubr.msk.f32.mxu1 %vm583_vm1, %v563_v28  ;;  %v566_v35 = vmax.f32 %v500_v30, 0.0 }
 0x1d4   :  { %v1098_v33 = vpop.f32.mrf.mxu1  ;;  %1123 = vmatmul.mubr.msk.f32.vlgmr.msra.gmra.mxu1 %vm583_vm1, %v564_v29 }
 0x1d5   :  { %v565_v34 = vmax.f32 %v495_v32, 0.0  ;;  %v510_v36 = vadd.f32 %v1098_v33, %v891_v22 }
 0x1d6   :  { %v504_v37 = vpop.f32.mrf.mxu1 }
 0x1d7   :  { %v505_v38 = vadd.f32 %v891_v22, %v504_v37  ;;  %1125 = vmatprep.mubr.msk.f32.mxu1 %vm583_vm1, %v565_v34  ;;  %v568_v41 = vmax.f32 %v510_v36, 0.0 }
 0x1d8   :  { %v1101_v39 = vpop.f32.mrf.mxu1  ;;  %1126 = vmatmul.mubr.msk.f32.gmra.mxu1 %vm583_vm1, %v566_v35 }
 0x1d9   :  { %v567_v40 = vmax.f32 %v505_v38, 0.0  ;;  %v520_v42 = vadd.f32 %v1101_v39, %v891_v22 }
 0x1da   :  { %v514_v43 = vpop.f32.mrf.mxu1 }
 0x1db   :  { %v515_v44 = vadd.f32 %v891_v22, %v514_v43  ;;  %1128 = vmatprep.mubr.msk.f32.mxu1 %vm583_vm1, %v567_v40  ;;  %v570_v47 = vmax.f32 %v520_v42, 0.0 }
 0x1dc   :  { %v1104_v45 = vpop.f32.mrf.mxu1  ;;  %1129 = vmatmul.mubr.msk.f32.gmra.mxu1 %vm583_vm1, %v568_v41 }
 0x1dd   :  { %v569_v46 = vmax.f32 %v515_v44, 0.0  ;;  %v530_v48 = vadd.f32 %v1104_v45, %v891_v22 }
 0x1de   :  { %v524_v49 = vpop.f32.mrf.mxu1 }
 0x1df   :  { %v525_v50 = vadd.f32 %v891_v22, %v524_v49  ;;  %1131 = vmatprep.mubr.msk.f32.mxu1 %vm583_vm1, %v569_v46  ;;  %v572_v53 = vmax.f32 %v530_v48, 0.0 }
 0x1e0   :  { %v1107_v51 = vpop.f32.mrf.mxu1  ;;  %1132 = vmatmul.mubr.msk.f32.gmra.mxu1 %vm583_vm1, %v570_v47 }
 0x1e1   :  { %v571_v52 = vmax.f32 %v525_v50, 0.0  ;;  %v540_v54 = vadd.f32 %v1107_v51, %v891_v22 }
 0x1e2   :  { %v534_v55 = vpop.f32.mrf.mxu1 }
 0x1e3   :  { %v535_v56 = vadd.f32 %v891_v22, %v534_v55  ;;  %1134 = vmatprep.mubr.msk.f32.mxu1 %vm583_vm1, %v571_v52  ;;  %v574_v59 = vmax.f32 %v540_v54, 0.0 }
 0x1e4   :  { %v1110_v57 = vpop.f32.mrf.mxu1  ;;  %1135 = vmatmul.mubr.msk.f32.gmra.mxu1 %vm583_vm1, %v572_v53 }
 0x1e5   :  { %v573_v58 = vmax.f32 %v535_v56, 0.0  ;;  %v550_v60 = vadd.f32 %v1110_v57, %v891_v22 }
 0x1e6   :  { %v544_v61 = vpop.f32.mrf.mxu1 }
 0x1e7   :  { %v545_v62 = vadd.f32 %v891_v22, %v544_v61  ;;  %1137 = vmatprep.mubr.msk.f32.mxu1 %vm583_vm1, %v573_v58  ;;  %v576_v1 = vmax.f32 %v550_v60, 0.0 }
 0x1e8   :  { %v1113_v63 = vpop.f32.mrf.mxu1  ;;  %1138 = vmatmul.mubr.msk.f32.gmra.mxu1 %vm583_vm1, %v574_v59 }
 0x1e9   :  { %v575_v0 = vmax.f32 %v545_v62, 0.0  ;;  %v560_v2 = vadd.f32 %v1113_v63, %v891_v22 }
 0x1ea   :  { %v554_v3 = vpop.f32.mrf.mxu1 }
 0x1eb   :  { %v555_v4 = vadd.f32 %v891_v22, %v554_v3  ;;  %1140 = vmatprep.mubr.msk.f32.mxu1 %vm583_vm1, %v575_v0  ;;  %v578_v6 = vmax.f32 %v560_v2, 0.0 }
 0x1ec   :  { %1141 = vmatmul.mubr.msk.f32.gmra.mxu1 %vm583_vm1, %v576_v1 }
 0x1ed   :  { %v577_v5 = vmax.f32 %v555_v4, 0.0 }
 0x1ef   :  { %1143 = vmatprep.mubr.msk.f32.mxu1 %vm583_vm1, %v577_v5 }
 0x1f0   :  { %1144 = vmatmul.mubr.msk.f32.gmra.mxu1 %vm583_vm1, %v578_v6 }
 0x294   :  { %v1124_v7 = vpop.f32.mrf.mxu1 }
 0x296   :  { %v698_v8 = vpop.f32.mrf.mxu1 }
 0x297   :  { %v959_v9 = vpack.c.bf16 %v1124_v7, %v698_v8 }
 0x298   :  { %v1127_v10 = vpop.f32.mrf.mxu1 }
 0x299   :  { %960 = vst [vmem:[#allocation8] sm:$0xff] %v959_v9  }
 0x29a   :  { %v708_v11 = vpop.f32.mrf.mxu1 }
 0x29b   :  { %v964_v12 = vpack.c.bf16 %v1127_v10, %v708_v11 }
 0x29c   :  { %v1130_v13 = vpop.f32.mrf.mxu1 }
 0x29d   :  { %996 = vst [vmem:[#allocation8 + $0x8] sm:$0xff] %v964_v12  }
 0x29e   :  { %v718_v14 = vpop.f32.mrf.mxu1 }
 0x29f   :  { %v969_v15 = vpack.c.bf16 %v1130_v13, %v718_v14 }
 0x2a0   :  { %v1133_v16 = vpop.f32.mrf.mxu1 }
 0x2a1   :  { %997 = vst [vmem:[#allocation8 + $0x10] sm:$0xff] %v969_v15  }
 0x2a2   :  { %v728_v17 = vpop.f32.mrf.mxu1 }
 0x2a3   :  { %v974_v18 = vpack.c.bf16 %v1133_v16, %v728_v17 }
 0x2a4   :  { %v1136_v19 = vpop.f32.mrf.mxu1 }
 0x2a5   :  { %998 = vst [vmem:[#allocation8 + $0x18] sm:$0xff] %v974_v18  }
 0x2a6   :  { %v738_v20 = vpop.f32.mrf.mxu1 }
 0x2a7   :  { %v979_v21 = vpack.c.bf16 %v1136_v19, %v738_v20 }
 0x2a8   :  { %v1139_v22 = vpop.f32.mrf.mxu1 }
 0x2a9   :  { %999 = vst [vmem:[#allocation8 + $0x20] sm:$0xff] %v979_v21  }
 0x2aa   :  { %v748_v23 = vpop.f32.mrf.mxu1 }
 0x2ab   :  { %v984_v24 = vpack.c.bf16 %v1139_v22, %v748_v23 }
 0x2ac   :  { %v1142_v25 = vpop.f32.mrf.mxu1 }
 0x2ad   :  { %1000 = vst [vmem:[#allocation8 + $0x28] sm:$0xff] %v984_v24  }
 0x2ae   :  { %v758_v26 = vpop.f32.mrf.mxu1 }
 0x2af   :  { %v989_v27 = vpack.c.bf16 %v1142_v25, %v758_v26 }
 0x2b0   :  { %v1145_v28 = vpop.f32.mrf.mxu1 }
 0x2b1   :  { %1001 = vst [vmem:[#allocation8 + $0x30] sm:$0xff] %v989_v27  }
 0x2b2   :  { %v768_v29 = vpop.f32.mrf.mxu1 }
 0x2b3   :  { %v994_v30 = vpack.c.bf16 %v1145_v28, %v768_v29 }
 0x2b5   :  { %1002 = vst [vmem:[#allocation8 + $0x38] sm:$0xff] %v994_v30  }
 0x2b6   :  { %1221 = shalt.err (!%p1218_p0)
}
 0x2b7   :  { %s1242_s10 = smov 64   ;;  %s1243_s11 = smov 4  }
 0x2b8   :  { %868 = dma.vmem_to_hbm [thread:$0]  %s863_s8, 1024, %s1403_s5, [#allocation5], %s1242_s10, %s1242_s10, %s1243_s11  }
 0x2b9   :  { %1234 = dma.done.wait [#allocation5], 1024  }
 0x2ba   :  { %1235 = vsyncadd [#allocation5], 4294966272 }
 0x2bb   :  { %872 = vsyncpa [#allocation4], 1 }
 0x2bc   :  { %873 = vsyncpa [#allocation7], 1 }
 0x2bd   :  { %874 = vsyncpa [#allocation5], 1 }

</bundles_post_ra>
